<compile_context>
chip_gen: v6e
topology: v6e:2x2x1
jax: 0.10.0
libtpu: 0.0.40
codegen_flags: <defaults>
</compile_context>

<pallas_src>
import functools
import math

import jax
import jax.numpy as jnp
from jax.experimental import pallas as pl
from jax.experimental.pallas import tpu as pltpu


def _rnn_dropout_kernel(x_ref, u_ref, o_ref, *, keep_prob: float):
    """x_ref/o_ref: (BB, TS, H') tile; u_ref: (BB, 1, H') uniforms in [0, 1)."""
    # Inverted dropout mask, built once per (batch, hidden') and broadcast
    # over the sequence tile (variational / "locked" dropout).
    mask = jnp.where(u_ref[...] < keep_prob, 1.0 / keep_prob, 0.0)
    o_ref[...] = x_ref[...] * mask.astype(x_ref.dtype)


def _block_budget():
    """(target block bytes, vmem_limit_bytes or None), per TPU generation."""
    try:
        kind = jax.devices()[0].device_kind.lower()
    except Exception:  # pragma: no cover - defensive
        kind = ""
    if ("v6" in kind) or ("v7" in kind):
        # v6e/v7x: bigger blocks amortize the ~0.35 us per-grid-step cost
        # against 1.4-3.2 TB/s HBM.  4x double-buffered 6 MiB blocks ~= 24 MiB;
        # raise the scoped-VMEM limit with headroom (48 MiB < v7x 64 MiB phys).
        return 6 * 1024 * 1024, 48 * 1024 * 1024
    # v5e (16 MiB default scoped VMEM) and unknown chips: stay conservative.
    return 2 * 1024 * 1024, None


def _choose_tiles(B, S, H, itemsize, target_bytes):
    """Pick (BB, TS) for blocks of shape (BB, TS, H)."""
    # Sublane multiple for the second-to-last dim: 8 (f32), 16 (bf16), 32 (i8).
    sub = 8 * max(1, 4 // max(1, itemsize))
    row_bytes = S * H * itemsize  # one batch row with the full sequence

    if row_bytes <= target_bytes:
        # Grow along batch first (no artificial BB cap), keep the whole
        # sequence per block -> short-S / many-B shapes still hit the target.
        BB = max(1, min(B, target_bytes // max(1, row_bytes)))
        TS = S
    else:
        BB = 1
        ts = max(1, target_bytes // max(1, H * itemsize))
        TS = min(S, max(sub, (ts // sub) * sub))

    # Guarantee >=2 grid steps along a parallel axis so v7x's second
    # TensorCore gets work (only matters when the whole array fit one block).
    if pl.cdiv(B, BB) == 1 and pl.cdiv(S, TS) == 1:
        if B >= 2:
            BB = (B + 1) // 2
        elif S >= 2 * sub:
            TS = ((S + 1) // 2 + sub - 1) // sub * sub
    return BB, TS


def rnn_dropout(x: jax.Array, p: float = 0.5, *, training: bool = True,
                key: jax.Array | None = None) -> jax.Array:
    """Pallas implementation of RNNDropout.forward."""
    if (not training) or p == 0.0:
        return x
    if not (0.0 < p < 1.0):
        # PyTorch's bernoulli_(0)/div_(0) path is degenerate (NaNs); reject.
        raise ValueError(f"dropout probability must be in [0, 1), got {p}")
    if key is None:
        key = jax.random.PRNGKey(0)

    B, S, H = x.shape
    itemsize = jnp.dtype(x.dtype).itemsize
    keep_prob = 1.0 - float(p)

    # Per-(batch, hidden) uniforms -> one dropout mask per batch row, shared
    # across the sequence axis.
    u = jax.random.uniform(key, (B, H), dtype=jnp.float32)

    # Lane-dense packing: fold k sequence steps into the last dim so the
    # stored last dim is a multiple of 128 (avoids masked vst.msk stores).
    k = 1
    if H % 128 != 0:
        k = 128 // math.gcd(H, 128)
        if S % k != 0:
            k = 1  # fallback: partial stores, still correct
    Sp, Hp = S // k, H * k
    x2 = x.reshape(B, Sp, Hp)                     # free (contiguous) reshape
    u2 = (jnp.tile(u, (1, k)) if k > 1 else u)[:, None, :]   # (B, 1, Hp)

    target_bytes, vmem_limit = _block_budget()
    BB, TS = _choose_tiles(B, Sp, Hp, itemsize, target_bytes)
    # Sequence axis innermost: u's block index is invariant along it, so the
    # (BB, 1, Hp) mask tile is not re-DMA'd between consecutive steps.
    grid = (pl.cdiv(B, BB), pl.cdiv(Sp, TS))

    kernel = functools.partial(_rnn_dropout_kernel, keep_prob=keep_prob)

    y2 = pl.pallas_call(
        kernel,
        out_shape=jax.ShapeDtypeStruct((B, Sp, Hp), x.dtype),
        grid=grid,
        in_specs=[
            pl.BlockSpec((BB, TS, Hp), lambda bi, si: (bi, si, 0)),
            pl.BlockSpec((BB, 1, Hp), lambda bi, si: (bi, 0, 0)),
        ],
        out_specs=pl.BlockSpec((BB, TS, Hp), lambda bi, si: (bi, si, 0)),
        compiler_params=pltpu.CompilerParams(
            # Blocks are fully independent, so both axes can be sharded across
            # TensorCores on v7x.
            dimension_semantics=("parallel", "parallel"),
            vmem_limit_bytes=vmem_limit,
        ),
        cost_estimate=pl.CostEstimate(
            flops=int(B * S * H),
            transcendentals=0,
            bytes_accessed=int(2 * B * S * H * itemsize + B * Hp * 4),
        ),
        # TODO(synk): offer input_output_aliases={0: 0} for callers that can
        # donate x (in-place dropout) to drop the extra HBM output allocation.
    )(x2, u2)
    return y2.reshape(B, S, H)


if __name__ == "__main__":
    root = jax.random.PRNGKey(0)
    kx, kd = jax.random.split(root)

    B, S, H = 2, 8, 32
    x = jax.random.normal(kx, (B, S, H), dtype=jnp.float32)

    p = 0.5
    y = jax.block_until_ready(rnn_dropout(x, p=p, training=True, key=kd))

    # Sanity: every element is either 0 or x/(1-p), and the keep/drop mask is
    # identical across the sequence axis (variational dropout).
    scaled = x / (1.0 - p)
    is_zero = jnp.isclose(y, 0.0)
    is_scaled = jnp.isclose(y, scaled, rtol=1e-5, atol=1e-5)
    assert bool(jnp.all(is_zero | is_scaled)), "output values not in {0, x/(1-p)}"
    mask = jnp.where(is_zero, 0.0, 1.0)
    assert bool(jnp.all(mask == mask[:, :1, :])), "mask varies across seq axis"

    # Eval mode / p == 0 -> identity.
    y_eval = jax.block_until_ready(rnn_dropout(x, p=p, training=False, key=kd))
    assert bool(jnp.all(y_eval == x))
    y_p0 = jax.block_until_ready(rnn_dropout(x, p=0.0, training=True, key=kd))
    assert bool(jnp.all(y_p0 == x))

    print("KERNEL_OK")
</pallas_src>

<mosaic_0001>
module attributes {stable_mosaic.version = 11 : i64} {
  func.func @_rnn_dropout_kernel(%arg0: i32, %arg1: i32, %arg2: memref<1x2x128xf32, #tpu.memory_space<vmem>>, %arg3: memref<1x1x128xf32, #tpu.memory_space<vmem>>, %arg4: memref<1x2x128xf32, #tpu.memory_space<vmem>>) attributes {dimension_semantics = [#tpu.dimension_semantics<parallel>, #tpu.dimension_semantics<parallel>], iteration_bounds = array<i64: 2, 1>, scalar_prefetch = 0 : i64, scratch_operands = 0 : i64, tpu.core_type = #tpu.core_type<tc>, window_params = [{transform_indices = @transform_0, window_bounds = array<i64: 1, 2, 128>}, {transform_indices = @transform_1, window_bounds = array<i64: 1, 1, 128>}, {transform_indices = @transform_2, window_bounds = array<i64: 1, 2, 128>}]} {
    %c0 = arith.constant 0 : index
    %c0_0 = arith.constant 0 : index
    %c0_1 = arith.constant 0 : index
    %0 = vector.load %arg3[%c0, %c0_0, %c0_1] : memref<1x1x128xf32, #tpu.memory_space<vmem>>, vector<1x1x128xf32>
    %cst = arith.constant 5.000000e-01 : f32
    %1 = vector.broadcast %cst : f32 to vector<1x1x128xf32>
    %2 = arith.cmpf olt, %0, %1 : vector<1x1x128xf32>
    %cst_2 = arith.constant 2.000000e+00 : f32
    %cst_3 = arith.constant 0.000000e+00 : f32
    %3 = vector.broadcast %cst_2 : f32 to vector<1x1x128xf32>
    %4 = vector.broadcast %cst_3 : f32 to vector<1x1x128xf32>
    %5 = arith.select %2, %3, %4 : vector<1x1x128xi1>, vector<1x1x128xf32>
    %c0_4 = arith.constant 0 : index
    %c0_5 = arith.constant 0 : index
    %c0_6 = arith.constant 0 : index
    %6 = vector.load %arg2[%c0_4, %c0_5, %c0_6] : memref<1x2x128xf32, #tpu.memory_space<vmem>>, vector<1x2x128xf32>
    %7 = vector.broadcast %5 : vector<1x1x128xf32> to vector<1x2x128xf32>
    %8 = arith.mulf %6, %7 : vector<1x2x128xf32>
    %c0_7 = arith.constant 0 : index
    %c0_8 = arith.constant 0 : index
    %c0_9 = arith.constant 0 : index
    %9 = vector.load %arg4[%c0_7, %c0_8, %c0_9] : memref<1x2x128xf32, #tpu.memory_space<vmem>>, vector<1x2x128xf32>
    tpu.vector_store %arg4[%c0_7, %c0_8, %c0_9], %8 {strides = array<i32>} : memref<1x2x128xf32, #tpu.memory_space<vmem>>, vector<1x2x128xf32>,
    return
  }
  func.func @transform_0(%arg0: i32, %arg1: i32) -> (i32, i32, i32) {
    %c0_i32 = arith.constant 0 : i32
    %c0_i32_0 = arith.constant 0 : i32
    return %arg0, %arg1, %c0_i32 : i32, i32, i32
  }
  func.func @transform_1(%arg0: i32, %arg1: i32) -> (i32, i32, i32) {
    %c0_i32 = arith.constant 0 : i32
    %c0_i32_0 = arith.constant 0 : i32
    %c0_i32_1 = arith.constant 0 : i32
    return %arg0, %c0_i32, %c0_i32_0 : i32, i32, i32
  }
  func.func @transform_2(%arg0: i32, %arg1: i32) -> (i32, i32, i32) {
    %c0_i32 = arith.constant 0 : i32
    %c0_i32_0 = arith.constant 0 : i32
    return %arg0, %arg1, %c0_i32 : i32, i32, i32
  }
}

</mosaic_0001>

<bundles_post_ra>
// kernel: tpu_custom_call.1
= control target key start
LH: loop header
LB: loop body
LE: loop exit
PB: predicated region body
PF: predicated region fallthrough
CT: control target
= control target key end

     0   :  { %7 = vsyncpa [#allocation3], 0  ;;  %s744_s0 = inlined_call_operand.hbm [shape: f32[2,2,128], index: 0, kind: input, shape index: {}]   ;;  %s745_s1 = inlined_call_operand.hbm [shape: f32[2,1,128], index: 1, kind: input, shape index: {}]   ;;  %s746_s2 = inlined_call_operand.hbm [shape: f32[2,2,128], index: 2, kind: output, shape index: {}]  }
   0x1   :  { %9 = vsyncpa [#allocation3 + $0x1], 0 }
   0x2   :  { %10 = vsyncpa [#allocation6], 0 }
   0x3   :  { %12 = vsyncpa [#allocation6 + $0x1], 0 }
   0x4   :  { %13 = vsyncpa [#allocation4], 0 }
   0x5   :  { %15 = vsyncpa [#allocation4 + $0x1], 0  ;;  %s580_s9 = smov 0   ;;  %s582_s10 = smov 0  }
   0x6   :  { %s584_s11 = smov 0   ;;  %s586_s12 = smov 0  }
   0x7   :  { %s588_s13 = smov 0   ;;  %s590_s14 = smov 0  }
   0x8 LB: > { %s337_s15 = sadd.s32 4294967295, %s559_s14   ;;  %s338_s16 = sadd.s32 4294967294, %s559_s14   ;;  %s559_s14 = sphi %s590_s14, %s21_s14   ;;  %s555_s13 = sphi %s588_s13, %s758_s13   ;;  %s551_s12 = sphi %s586_s12, %s757_s12   ;;  %s547_s11 = sphi %s584_s11, %s756_s11   ;;  %s543_s10 = sphi %s582_s10, %s755_s10   ;;  %s539_s9 = sphi %s580_s9, %s754_s9  }
   0x9   : > { %s33_s17 = sadd.s32 1, %s555_s13  ;;  %s42_s18 = sadd.s32 1, %s547_s11 }
   0xa   : > { %p35_p0 = scmp.ge.s32.totalorder %s33_s17, 2  ;;  %p49_p1 = scmp.ne.s32.totalorder %s547_s11, %s543_s10 }
   0xb   : > { %p50_p2 = scmp.eq.s32.totalorder %s559_s14, 0  ;;  %p55_p3 = scmp.ne.s32.totalorder %s543_s10, %s539_s9 }
   0xc   : > { %s760_s17 = smov (%p35_p0, %s33_s17), 0  ;;  %p56_p5 = scmp.eq.s32.totalorder %s337_s15, 0 }
   0xd   : > { %p621_p4 = por %p50_p2, %p49_p1  ;;  %s37_s20 = ssub.s32 %s555_s13, %s760_s17 }
   0xe   : > { %p107_p6 = scmp.eq.s32.totalorder %s337_s15, 1  ;;  %p40_p7 = scmp.eq.s32.totalorder %s37_s20, 0 }
   0xf   : > { %p627_p8 = por %p56_p5, %p55_p3  ;;  %p113_p10 = scmp.eq.s32.totalorder %s338_s16, 1 }
  0x10   : > { %p631_p9 = por %p107_p6, %p49_p1  ;;  %p368_p13 = scmp.lt.s32.totalorder %s559_s14, 2 }
  0x11   : > { %s636_s23 = scalar_select %p40_p7, %s547_s11, %s42_s18  }
  0x12   : > { %p638_p11 = por %p113_p10, %p55_p3  ;;  %s645_s25 = sand.u32 1, %s547_s11  }
  0x13   : > { %s341_s26 = sshll.u32 %s645_s25, 1  ;;  %s342_s27 = sshll.u32 %s555_s13, 5 }
  0x14   : > { %s143_s30 = scalar_lea.hbm %s744_s0, %s342_s27  ;;  %s137_s3 = scalar_lea.vmem [#allocation2], %s341_s26 }
  0x15   : > { %s145_s4 = sshll.u32 %s137_s3, 4  ;;  %p654_p0 = pnand %p368_p13, %p621_p4  ;;  %s146_s4 = int_to_ptr.vmem [resolvable:$true] %s145_s4 }
  0x16   : > { %p344_p1 = scmp.ge.s32.totalorder %s559_s14, 1  ;;  %p167_p2 = scmp.lt.s32.totalorder %s559_s14, 3 }
  0x17   : > { %s134_s6 = scalar_lea.sflag [#allocation3], %s645_s25  ;;  %p421_p3 = pneg %p654_p0 }
  0x18   : > { %s432_s7 = scalar_lea.vmem %s146_s4, 32  ;;  %s561_s8 = smov [#allocation2]  }
  0x19   : > { %p433_p5 = scmp.ne.s32.totalorder %s146_s4, %s432_s7  ;;  %s437_s15 = sshll.u32 %s561_s8, 4  ;;  %s438_s15 = int_to_ptr.vmem [resolvable:$false] %s437_s15 }
  0x1a   : > { %s439_s16 = scalar_lea.vmem %s438_s15, 64  ;;  %p440_p4 = scmp.lt.s32.totalorder %s146_s4, %s438_s15 }
  0x1b   : > { %p435_p6 = pnand %p433_p5, %p421_p3  ;;  %p441_p10 = scmp.lt.s32.totalorder %s439_s16, %s432_s7 }
  0x1d   : > { %p436_p7 = pneg %p435_p6  ;;  %p442_p13 = por %p441_p10, %p440_p4 }
  0x1f   : > { %p443_p12 = pnand %p442_p13, %p436_p7 }
  0x21   : > { %446 = shalt.err (!%p443_p12)
}
  0x22   : > { %360 = dma.hbm_to_vmem [thread:$0]  (!%p654_p0), %s143_s30, 32, %s146_s4, %s134_s6  }
  0x23   : > { %p672_p5 = pnand %p344_p1, %p167_p2  ;;  %s343_s19 = sshll.u32 %s555_s13, 4 }
  0x24   : > { %s155_s20 = scalar_lea.vmem [#allocation5], %s645_s25  ;;  %s160_s29 = scalar_lea.hbm %s745_s1, %s343_s19 }
  0x25   : > { %s162_s26 = sshll.u32 %s155_s20, 4  ;;  %s153_s3 = scalar_lea.sflag [#allocation6], %s645_s25  ;;  %s163_s26 = int_to_ptr.vmem [resolvable:$true] %s162_s26 }
  0x26   : > { %s460_s7 = scalar_lea.vmem %s163_s26, 16  ;;  %s562_s30 = smov [#allocation5]  }
  0x27   : > { %p461_p12 = scmp.ne.s32.totalorder %s163_s26, %s460_s7  ;;  %s465_s4 = sshll.u32 %s562_s30, 4  ;;  %s466_s4 = int_to_ptr.vmem [resolvable:$false] %s465_s4 }
  0x28   : > { %s467_s6 = scalar_lea.vmem %s466_s4, 32  ;;  %p468_p1 = scmp.lt.s32.totalorder %s163_s26, %s466_s4 }
  0x29   : > { %p463_p6 = pnand %p461_p12, %p421_p3  ;;  %p469_p2 = scmp.lt.s32.totalorder %s467_s6, %s460_s7 }
  0x2b   : > { %p464_p7 = pneg %p463_p6  ;;  %p470_p4 = por %p469_p2, %p468_p1 }
  0x2d   : > { %p471_p10 = pnand %p470_p4, %p464_p7 }
  0x2f   : > { %474 = shalt.err (!%p471_p10)
}
  0x30   : > { %363 = dma.hbm_to_vmem [thread:$0]  (!%p654_p0), %s160_s29, 16, %s163_s26, %s153_s3  }
  0x31   : > { %171 = sbr.rel (%p672_p5) target bundleno = 81 (0x51), region = 28  ;;  %s690_s25 = sand.u32 (!%p672_p5), 1, %s543_s10  }
  0x32   : > { %s345_s8 = sshll.u32 (!%p672_p5), %s690_s25, 1  ;;  %s174_s15 = scalar_lea.sflag (!%p672_p5), [#allocation3], %s690_s25 }
  0x33   : > { %s177_s16 = scalar_lea.vmem (!%p672_p5), [#allocation2], %s345_s8 }
  0x36   : > { %526 = dma.done.wait (%p627_p8), %s174_s15, 32  }
  0x37   : > { %528 = vsyncadd (%p627_p8), %s174_s15, 4294967264  ;;  %s183_s5 = scalar_lea.sflag [#allocation6], %s690_s25  ;;  %s185_s18 = scalar_lea.vmem [#allocation5], %s690_s25 }
  0x38   : > { %530 = dma.done.wait (%p627_p8), %s183_s5, 16  }
  0x39   : > { %532 = vsyncadd (%p627_p8), %s183_s5, 4294967280  ;;  %v215_v0 = vlaneseq  ;;  %v210_v3 = vld [vmem:[%s185_s18] sm:$0x1]  ;;  %v563_v4 = vmov 0.0   ;;  %s209_s19 = scalar_lea.vmem [#allocation7], %s345_s8  ;;  %s348_s26 = sshll.u32 %s551_s12, 5 }
  0x3a   : > { %vm211_vm0 = vcmp.lt.f32.partialorder %v210_v3, 0.5  ;;  %v213_v6 = vld [vmem:[%s177_s16] sm:$0x3]  ;;  %s237_s20 = sshll.u32 %s209_s19, 4  ;;  %s235_s28 = scalar_lea.hbm %s746_s2, %s348_s26  ;;  %s238_s20 = int_to_ptr.vmem [resolvable:$true] %s237_s20 }
  0x3b   : > { %v216_v1 = vshrl.u32 %v215_v0, 7  ;;  %v212_v5 = vsel %vm211_vm0, 2.0, %v563_v4  ;;  %s223_s29 = scalar_lea.sflag [#allocation4], %s690_s25  ;;  %s475_s3 = scalar_lea.vmem %s238_s20, 32 }
  0x3c   : > { %p476_p8 = scmp.ne.s32.totalorder %s238_s20, %s475_s3  ;;  %s564_s7 = smov [#allocation7]  }
  0x3d   : > { %v217_v2 = vsub.s32 0, %v216_v1  ;;  %s479_s30 = sshll.u32 %s564_s7, 4  ;;  %s480_s30 = int_to_ptr.vmem [resolvable:$false] %s479_s30 }
  0x3e   : > { %p477_p0 = pnand %p476_p8, %p631_p9  ;;  %s481_s4 = scalar_lea.vmem %s480_s30, 64 }
  0x3f   : > { %v218_v7 = vrot.slane %v212_v5, %v217_v2  ;;  %p482_p13 = scmp.lt.s32.totalorder %s238_s20, %s480_s30  ;;  %p483_p5 = scmp.lt.s32.totalorder %s481_s4, %s475_s3 }
  0x40   : > { %p478_p3 = pneg %p477_p0 }
  0x41   : > { %v220_v8 = vmul.f32 %v218_v7, %v213_v6  ;;  %p484_p12 = por %p483_p5, %p482_p13 }
  0x43   : > { %221 = vst [vmem:[%s209_s19] sm:$0x3] %v220_v8  ;;  %p485_p6 = pnand %p484_p12, %p478_p3 }
  0x45   : > { %488 = shalt.err (!%p485_p6)
}
  0x46   : > { %s489_s12 = scalar_lea.hbm %s235_s28, 32  ;;  %s493_s8 = scalar_lea.hbm %s746_s2, 64 }
  0x47   : > { %p490_p7 = scmp.ne.s32.totalorder %s235_s28, %s489_s12  ;;  %p494_p4 = scmp.lt.s32.totalorder %s235_s28, %s746_s2 }
  0x48   : > { %p495_p10 = scmp.lt.s32.totalorder %s493_s8, %s489_s12 }
  0x49   : > { %p491_p1 = pnand %p490_p7, %p631_p9 }
  0x4a   : > { %p496_p8 = por %p495_p10, %p494_p4 }
  0x4b   : > { %p492_p2 = pneg %p491_p1 }
  0x4d   : > { %p497_p0 = pnand %p496_p8, %p492_p2 }
  0x4f   : > { %500 = shalt.err (!%p497_p0)
}
  0x50   : > { %355 = dma.vmem_to_hbm [thread:$0]  (%p631_p9), %s238_s20, 32, %s235_s28, %s223_s29  }
  0x51 PF: > { %s249_s5 = sand.u32 1, %s539_s9   ;;  %p753_p3 = scmp.ge.s32.totalorder %s559_s14, 2 }
  0x52   : > { %s250_s18 = scalar_lea.sflag [#allocation4], %s249_s5 }
  0x53   : > { %p365_p13 = pnand %p753_p3, %p638_p11 }
  0x55   : > { %p366_p5 = pneg %p365_p13 }
  0x57   : > { %534 = dma.done.wait (%p366_p5), %s250_s18, 32  }
  0x58   : > { %536 = vsyncadd (%p366_p5), %s250_s18, 4294967264  ;;  %s21_s14 = sadd.s32 1, %s559_s14   ;;  %s754_s9 = smov %s543_s10 }
  0x59   : > { %p18_p12 = scmp.ge.s32.totalorder %s21_s14, 4   ;;  %s755_s10 = smov %s547_s11 }
  0x5a   : > { %s756_s11 = smov %s636_s23  ;;  %s757_s12 = smov %s555_s13 }
  0x5b   : > { %s758_s13 = smov %s760_s17  ;;  %20 = sbr.rel (!%p18_p12) target bundleno = 8 (0x8), region = 86 }
  0x60   :  { %255 = vsyncpa [#allocation3], 1 }
  0x61   :  { %257 = vsyncpa [#allocation3 + $0x1], 1 }
  0x62   :  { %258 = vsyncpa [#allocation6], 1 }
  0x63   :  { %260 = vsyncpa [#allocation6 + $0x1], 1 }
  0x64   :  { %261 = vsyncpa [#allocation4], 1 }
  0x65   :  { %263 = vsyncpa [#allocation4 + $0x1], 1 }

</bundles_post_ra>
